<compile_context>
chip_gen: v7x
topology: tpu7x:2x2x1
jax: 0.10.0
libtpu: 0.0.40
codegen_flags: <defaults>
</compile_context>

<pallas_src>
import functools

import jax
import jax.numpy as jnp
from jax.experimental import pallas as pl
from jax.experimental.pallas import tpu as pltpu


_LANE = 128          # TPU lane width
_MIB = 1024 * 1024


def _round_up(n: int, m: int) -> int:
    return ((n + m - 1) // m) * m


# ---------------------------------------------------------------------------
# Kernel
# ---------------------------------------------------------------------------
def _audio_model_kernel(x_ref,
                        we1_ref, be1_ref, we2_ref, be2_ref,
                        wd1_ref, bd1_ref, wd2_ref, bd2_ref,
                        dec_ref, enc_ref):
    """Fused encoder+decoder forward for one batch tile.

    Four MXU matmuls with bf16 inputs / f32 accumulation; bias adds, ReLUs and
    the f32->bf16 input cast run on the VPU.  Both outputs (decoded, encoded)
    are produced in one pass so the latent never round-trips HBM.
    """
    # x arrives as f32 (no wrapper-side cast pass); cast to bf16 in-register.
    x = x_ref[...].astype(we1_ref.dtype)                              # (TB, W)

    # ---- Encoder ----
    h = jnp.dot(x, we1_ref[...], preferred_element_type=jnp.float32) + be1_ref[...]
    h = jnp.maximum(h, 0.0)                                           # ReLU, f32
    z = jnp.dot(h.astype(we2_ref.dtype), we2_ref[...],
                preferred_element_type=jnp.float32) + be2_ref[...]    # (TB, Lp)

    # Store the encoded output unpadded (first L lanes); padded lanes are
    # exactly zero (zero weight cols + zero bias), so this is the true latent.
    enc_ref[...] = z[:, :enc_ref.shape[-1]].astype(enc_ref.dtype)

    # ---- Decoder (consumes the in-register f32 latent, padded to Lp lanes) ----
    g = jnp.dot(z.astype(wd1_ref.dtype), wd1_ref[...],
                preferred_element_type=jnp.float32) + bd1_ref[...]
    g = jnp.maximum(g, 0.0)                                           # ReLU, f32
    y = jnp.dot(g.astype(wd2_ref.dtype), wd2_ref[...],
                preferred_element_type=jnp.float32) + bd2_ref[...]
    dec_ref[...] = y.astype(dec_ref.dtype)


# ---------------------------------------------------------------------------
# Wrapper helpers
# ---------------------------------------------------------------------------
def prepare_params(params, *, compute_dtype=jnp.bfloat16):
    """One-time weight prep, hoisted OUT of the jitted forward path.

    bf16-casts all weights for the MXU and zero-pads the latent dimension to a
    full 128-lane tile (zero weight columns/rows + zero bias columns, so the
    padding is mathematically a no-op).  Biases stay f32 (added to the f32
    accumulator)."""
    we1, be1, we2, be2, wd1, bd1, wd2, bd2 = params
    L = we2.shape[1]
    Lp = _round_up(max(L, _LANE), _LANE)
    return (
        we1.astype(compute_dtype),
        be1.astype(jnp.float32),
        jnp.pad(we2, ((0, 0), (0, Lp - L))).astype(compute_dtype),
        jnp.pad(be2, ((0, 0), (0, Lp - L))).astype(jnp.float32),
        jnp.pad(wd1, ((0, Lp - L), (0, 0))).astype(compute_dtype),
        bd1.astype(jnp.float32),
        wd2.astype(compute_dtype),
        bd2.astype(jnp.float32),
    )


def _pick_tile_b(B: int, tile_b: int) -> int:
    """Batch rows per grid step: MXU-friendly alignment, prefers a value that
    divides B exactly (avoids batch padding and post-kernel row-slice copies),
    and keeps >= 8 grid steps at large batches so the v7x megacore pipeline
    still has prefetch/writeback overlap."""
    tb = max(8, min(tile_b, _round_up(B, 8)))
    align = 8
    for a in (256, 128, 64, 32, 16, 8):
        if tb >= a:
            align = a
            tb = (tb // a) * a
            break
    # >= 8 grid steps (2 v7x cores x ~4 pipelined steps) when B is large enough.
    if B >= 8 * align:
        while tb > align and -(-B // tb) < 8:
            tb -= align
    # Prefer a tile that divides B exactly.
    if B % tb != 0:
        for cand in range(tb, align - 1, -align):
            if B % cand == 0:
                tb = cand
                break
    return tb


def _vmem_bytes(tb, W, H, L, Lp, x_bytes, out_bytes, w_bytes, w_bufs):
    """Per-step VMEM footprint estimate (streamed tiles double-buffered)."""
    streamed = 2 * tb * (W * x_bytes + W * out_bytes + L * out_bytes)
    weights = w_bufs * w_bytes * (W * H + H * Lp + Lp * H + H * W)
    biases = w_bufs * 4 * (2 * H + Lp + W)
    return streamed + weights + biases


def _resident_spec(shape):
    """Whole-array, constant-index block (stays VMEM-resident across the grid).

    Requests single buffering: the block never re-DMAs, so the default second
    buffer is dead VMEM (matters once W/H reach the thousands on v7x).  Falls
    back to the default spec if this JAX version lacks pipeline_mode."""
    idx = lambda i: (0, 0)
    buffered = getattr(pl, "Buffered", None)
    if buffered is not None:
        try:
            return pl.BlockSpec(shape, idx, pipeline_mode=buffered(1))
        except TypeError:
            pass
    return pl.BlockSpec(shape, idx)


def audio_model_forward(x, prepared_params, *, latent_dim,
                        tile_b: int = 1024, out_dtype=jnp.float32):
    """Returns (decoded, encoded) exactly like AudioModel.forward.

    `prepared_params` must come from prepare_params().  `latent_dim` is the
    unpadded latent size (the encoded output is written unpadded).  Set
    out_dtype=jnp.bfloat16 if the consumer tolerates it — the f32 decoded
    store is the largest single HBM stream in this bandwidth-bound kernel."""
    we1c, be1c, we2c, be2c, wd1c, bd1c, wd2c, bd2c = prepared_params
    B, W = x.shape
    H = we1c.shape[1]
    Lp = we2c.shape[1]
    L = latent_dim
    assert L <= Lp

    x_bytes = x.dtype.itemsize
    out_bytes = jnp.dtype(out_dtype).itemsize
    w_bytes = we1c.dtype.itemsize

    TB = _pick_tile_b(B, tile_b)
    # Shrink the tile if the per-step footprint would blow the VMEM budget
    # (conservatively assume double-buffered weights).
    budget = 32 * _MIB
    while TB > 8 and _vmem_bytes(TB, W, H, L, Lp, x_bytes, out_bytes, w_bytes, 2) > budget:
        TB = max(8, (TB // 2) // 8 * 8)

    Bp = _round_up(B, TB)
    xp = x if Bp == B else jnp.pad(x, ((0, Bp - B), (0, 0)))

    est = _vmem_bytes(TB, W, H, L, Lp, x_bytes, out_bytes, w_bytes, 2)
    # Explicit scoped-VMEM limit: v5e's default is only 16 MiB; keep headroom
    # while staying comfortably under v7x's 64 MiB physical VMEM.
    vmem_limit = int(max(16 * _MIB, min(48 * _MIB, est + 8 * _MIB)))

    grid = (Bp // TB,)

    dec, enc = pl.pallas_call(
        _audio_model_kernel,
        grid=grid,
        out_shape=(
            jax.ShapeDtypeStruct((Bp, W), out_dtype),   # decoded
            jax.ShapeDtypeStruct((Bp, L), out_dtype),   # encoded (unpadded)
        ),
        in_specs=[
            pl.BlockSpec((TB, W), lambda i: (i, 0)),           # x, streamed (f32)
            _resident_spec((W, H)), _resident_spec((1, H)),    # encoder layer 1
            _resident_spec((H, Lp)), _resident_spec((1, Lp)),  # encoder layer 2
            _resident_spec((Lp, H)), _resident_spec((1, H)),   # decoder layer 1
            _resident_spec((H, W)), _resident_spec((1, W)),    # decoder layer 2
        ],
        out_specs=(
            pl.BlockSpec((TB, W), lambda i: (i, 0)),
            pl.BlockSpec((TB, L), lambda i: (i, 0)),
        ),
        compiler_params=pltpu.CompilerParams(
            dimension_semantics=("parallel",),          # megacore sharding on v7x
            vmem_limit_bytes=vmem_limit,
        ),
    )(xp, we1c, be1c, we2c, be2c, wd1c, bd1c, wd2c, bd2c)

    if Bp != B:  # only when no batch tile dividing B was available
        dec, enc = dec[:B], enc[:B]
    return dec, enc


# ---------------------------------------------------------------------------
# Synthetic params + pure-JAX reference
# ---------------------------------------------------------------------------
def init_params(key, window, hidden, latent):
    """Deterministic synthetic parameter init (no checkpoint loading)."""
    ks = jax.random.split(key, 8)
    scale = lambda fan_in: 1.0 / jnp.sqrt(jnp.float32(fan_in))
    we1 = jax.random.normal(ks[0], (window, hidden), jnp.float32) * scale(window)
    be1 = jax.random.normal(ks[1], (1, hidden), jnp.float32) * 0.01
    we2 = jax.random.normal(ks[2], (hidden, latent), jnp.float32) * scale(hidden)
    be2 = jax.random.normal(ks[3], (1, latent), jnp.float32) * 0.01
    wd1 = jax.random.normal(ks[4], (latent, hidden), jnp.float32) * scale(latent)
    bd1 = jax.random.normal(ks[5], (1, hidden), jnp.float32) * 0.01
    wd2 = jax.random.normal(ks[6], (hidden, window), jnp.float32) * scale(hidden)
    bd2 = jax.random.normal(ks[7], (1, window), jnp.float32) * 0.01
    return (we1, be1, we2, be2, wd1, bd1, wd2, bd2)


def reference_forward(x, params):
    """Pure-JAX reference matching the kernel's mixed-precision recipe."""
    we1, be1, we2, be2, wd1, bd1, wd2, bd2 = params
    cdt = jnp.bfloat16
    xb = x.astype(cdt)
    h = jnp.dot(xb, we1.astype(cdt), preferred_element_type=jnp.float32) + be1
    h = jnp.maximum(h, 0.0)
    z = jnp.dot(h.astype(cdt), we2.astype(cdt),
                preferred_element_type=jnp.float32) + be2
    g = jnp.dot(z.astype(cdt), wd1.astype(cdt),
                preferred_element_type=jnp.float32) + bd1
    g = jnp.maximum(g, 0.0)
    y = jnp.dot(g.astype(cdt), wd2.astype(cdt),
                preferred_element_type=jnp.float32) + bd2
    return y, z


# TODO(synk): SequencePredictor (seq_prediction_forward) is not exercised by
# AudioModel.forward and its architecture is unspecified; omitted here.

if __name__ == "__main__":
    key = jax.random.PRNGKey(0)
    k_x, k_p = jax.random.split(key)

    # Small shapes consistent with an audio-window autoencoder.  batch=256 with
    # tile_b=128 exercises the batch grid (2 steps) with no batch padding, so
    # no post-kernel slice copies are emitted.
    batch, window, hidden, latent = 256, 256, 128, 32

    x = jax.random.normal(k_x, (batch, window), jnp.float32)
    params = init_params(k_p, window, hidden, latent)

    # Weight prep (bf16 cast + latent lane padding) runs once, outside the jit.
    prepared = prepare_params(params)

    fwd = jax.jit(functools.partial(audio_model_forward,
                                    latent_dim=latent, tile_b=128))
    decoded, encoded = fwd(x, prepared)
    jax.block_until_ready((decoded, encoded))

    ref_dec, ref_enc = reference_forward(x, params)
    assert decoded.shape == (batch, window) and encoded.shape == (batch, latent)
    assert jnp.allclose(decoded, ref_dec, atol=2e-2, rtol=2e-2)
    assert jnp.allclose(encoded, ref_enc, atol=2e-2, rtol=2e-2)

    print("KERNEL_OK")
</pallas_src>

<mosaic_0001>
module attributes {stable_mosaic.version = 11 : i64} {
  func.func @_audio_model_kernel(%arg0: i32, %arg1: memref<128x256xf32, #tpu.memory_space<vmem>>, %arg2: memref<256x128xbf16, #tpu.memory_space<vmem>>, %arg3: memref<1x128xf32, #tpu.memory_space<vmem>>, %arg4: memref<128x128xbf16, #tpu.memory_space<vmem>>, %arg5: memref<1x128xf32, #tpu.memory_space<vmem>>, %arg6: memref<128x128xbf16, #tpu.memory_space<vmem>>, %arg7: memref<1x128xf32, #tpu.memory_space<vmem>>, %arg8: memref<128x256xbf16, #tpu.memory_space<vmem>>, %arg9: memref<1x256xf32, #tpu.memory_space<vmem>>, %arg10: memref<128x256xf32, #tpu.memory_space<vmem>>, %arg11: memref<128x32xf32, #tpu.memory_space<vmem>>) attributes {dimension_semantics = [#tpu.dimension_semantics<parallel>], iteration_bounds = array<i64: 2>, scalar_prefetch = 0 : i64, scratch_operands = 0 : i64, tpu.core_type = #tpu.core_type<tc>, window_params = [{transform_indices = @transform_0, window_bounds = array<i64: 128, 256>}, {pipeline_mode = #tpu.pipeline_mode<synchronous>, transform_indices = @transform_1, window_bounds = array<i64: 256, 128>}, {pipeline_mode = #tpu.pipeline_mode<synchronous>, transform_indices = @transform_2, window_bounds = array<i64: 1, 128>}, {pipeline_mode = #tpu.pipeline_mode<synchronous>, transform_indices = @transform_3, window_bounds = array<i64: 128, 128>}, {pipeline_mode = #tpu.pipeline_mode<synchronous>, transform_indices = @transform_4, window_bounds = array<i64: 1, 128>}, {pipeline_mode = #tpu.pipeline_mode<synchronous>, transform_indices = @transform_5, window_bounds = array<i64: 128, 128>}, {pipeline_mode = #tpu.pipeline_mode<synchronous>, transform_indices = @transform_6, window_bounds = array<i64: 1, 128>}, {pipeline_mode = #tpu.pipeline_mode<synchronous>, transform_indices = @transform_7, window_bounds = array<i64: 128, 256>}, {pipeline_mode = #tpu.pipeline_mode<synchronous>, transform_indices = @transform_8, window_bounds = array<i64: 1, 256>}, {transform_indices = @transform_9, window_bounds = array<i64: 128, 256>}, {transform_indices = @transform_10, window_bounds = array<i64: 128, 32>}]} {
    %c0 = arith.constant 0 : index
    %c0_0 = arith.constant 0 : index
    %0 = vector.load %arg1[%c0, %c0_0] : memref<128x256xf32, #tpu.memory_space<vmem>>, vector<128x256xf32>
    %1 = arith.truncf %0 : vector<128x256xf32> to vector<128x256xbf16>
    %c0_1 = arith.constant 0 : index
    %c0_2 = arith.constant 0 : index
    %2 = vector.load %arg2[%c0_1, %c0_2] : memref<256x128xbf16, #tpu.memory_space<vmem>>, vector<256x128xbf16>
    %cst = arith.constant dense<0.000000e+00> : vector<128x128xf32>
    %3 = tpu.matmul %1, %2, %cst {dimension_numbers = #tpu.dot_dimension_numbers<[1], [0], [0], [1], [0, 0, 1, 1], [], []>} : vector<128x256xbf16>, vector<256x128xbf16>, vector<128x128xf32> -> vector<128x128xf32>
    %c0_3 = arith.constant 0 : index
    %c0_4 = arith.constant 0 : index
    %4 = vector.load %arg3[%c0_3, %c0_4] : memref<1x128xf32, #tpu.memory_space<vmem>>, vector<1x128xf32>
    %5 = vector.broadcast %4 : vector<1x128xf32> to vector<128x128xf32>
    %6 = arith.addf %3, %5 : vector<128x128xf32>
    %cst_5 = arith.constant 0.000000e+00 : f32
    %7 = vector.broadcast %cst_5 : f32 to vector<128x128xf32>
    %8 = arith.maximumf %6, %7 : vector<128x128xf32>
    %9 = arith.truncf %8 : vector<128x128xf32> to vector<128x128xbf16>
    %c0_6 = arith.constant 0 : index
    %c0_7 = arith.constant 0 : index
    %10 = vector.load %arg4[%c0_6, %c0_7] : memref<128x128xbf16, #tpu.memory_space<vmem>>, vector<128x128xbf16>
    %cst_8 = arith.constant dense<0.000000e+00> : vector<128x128xf32>
    %11 = tpu.matmul %9, %10, %cst_8 {dimension_numbers = #tpu.dot_dimension_numbers<[1], [0], [0], [1], [0, 0, 1, 1], [], []>} : vector<128x128xbf16>, vector<128x128xbf16>, vector<128x128xf32> -> vector<128x128xf32>
    %c0_9 = arith.constant 0 : index
    %c0_10 = arith.constant 0 : index
    %12 = vector.load %arg5[%c0_9, %c0_10] : memref<1x128xf32, #tpu.memory_space<vmem>>, vector<1x128xf32>
    %13 = vector.broadcast %12 : vector<1x128xf32> to vector<128x128xf32>
    %14 = arith.addf %11, %13 : vector<128x128xf32>
    %15 = vector.extract_strided_slice %14 {offsets = [0, 0], sizes = [128, 32], strides = [1, 1]} : vector<128x128xf32> to vector<128x32xf32>
    %c0_11 = arith.constant 0 : index
    %c0_12 = arith.constant 0 : index
    %16 = vector.load %arg11[%c0_11, %c0_12] : memref<128x32xf32, #tpu.memory_space<vmem>>, vector<128x32xf32>
    tpu.vector_store %arg11[%c0_11, %c0_12], %15 {strides = array<i32>} : memref<128x32xf32, #tpu.memory_space<vmem>>, vector<128x32xf32>,
    %17 = arith.truncf %14 : vector<128x128xf32> to vector<128x128xbf16>
    %c0_13 = arith.constant 0 : index
    %c0_14 = arith.constant 0 : index
    %18 = vector.load %arg6[%c0_13, %c0_14] : memref<128x128xbf16, #tpu.memory_space<vmem>>, vector<128x128xbf16>
    %cst_15 = arith.constant dense<0.000000e+00> : vector<128x128xf32>
    %19 = tpu.matmul %17, %18, %cst_15 {dimension_numbers = #tpu.dot_dimension_numbers<[1], [0], [0], [1], [0, 0, 1, 1], [], []>} : vector<128x128xbf16>, vector<128x128xbf16>, vector<128x128xf32> -> vector<128x128xf32>
    %c0_16 = arith.constant 0 : index
    %c0_17 = arith.constant 0 : index
    %20 = vector.load %arg7[%c0_16, %c0_17] : memref<1x128xf32, #tpu.memory_space<vmem>>, vector<1x128xf32>
    %21 = vector.broadcast %20 : vector<1x128xf32> to vector<128x128xf32>
    %22 = arith.addf %19, %21 : vector<128x128xf32>
    %cst_18 = arith.constant 0.000000e+00 : f32
    %23 = vector.broadcast %cst_18 : f32 to vector<128x128xf32>
    %24 = arith.maximumf %22, %23 : vector<128x128xf32>
    %25 = arith.truncf %24 : vector<128x128xf32> to vector<128x128xbf16>
    %c0_19 = arith.constant 0 : index
    %c0_20 = arith.constant 0 : index
    %26 = vector.load %arg8[%c0_19, %c0_20] : memref<128x256xbf16, #tpu.memory_space<vmem>>, vector<128x256xbf16>
    %cst_21 = arith.constant dense<0.000000e+00> : vector<128x256xf32>
    %27 = tpu.matmul %25, %26, %cst_21 {dimension_numbers = #tpu.dot_dimension_numbers<[1], [0], [0], [1], [0, 0, 1, 1], [], []>} : vector<128x128xbf16>, vector<128x256xbf16>, vector<128x256xf32> -> vector<128x256xf32>
    %c0_22 = arith.constant 0 : index
    %c0_23 = arith.constant 0 : index
    %28 = vector.load %arg9[%c0_22, %c0_23] : memref<1x256xf32, #tpu.memory_space<vmem>>, vector<1x256xf32>
    %29 = vector.broadcast %28 : vector<1x256xf32> to vector<128x256xf32>
    %30 = arith.addf %27, %29 : vector<128x256xf32>
    %c0_24 = arith.constant 0 : index
    %c0_25 = arith.constant 0 : index
    %31 = vector.load %arg10[%c0_24, %c0_25] : memref<128x256xf32, #tpu.memory_space<vmem>>, vector<128x256xf32>
    tpu.vector_store %arg10[%c0_24, %c0_25], %30 {strides = array<i32>} : memref<128x256xf32, #tpu.memory_space<vmem>>, vector<128x256xf32>,
    return
  }
  func.func @transform_0(%arg0: i32) -> (i32, i32) {
    %c0_i32 = arith.constant 0 : i32
    %c0_i32_0 = arith.constant 0 : i32
    return %arg0, %c0_i32 : i32, i32
  }
  func.func @transform_1(%arg0: i32) -> (i32, i32) {
    %c0_i32 = arith.constant 0 : i32
    %c0_i32_0 = arith.constant 0 : i32
    %c0_i32_1 = arith.constant 0 : i32
    return %c0_i32, %c0_i32_0 : i32, i32
  }
  func.func @transform_2(%arg0: i32) -> (i32, i32) {
    %c0_i32 = arith.constant 0 : i32
    %c0_i32_0 = arith.constant 0 : i32
    %c0_i32_1 = arith.constant 0 : i32
    return %c0_i32, %c0_i32_0 : i32, i32
  }
  func.func @transform_3(%arg0: i32) -> (i32, i32) {
    %c0_i32 = arith.constant 0 : i32
    %c0_i32_0 = arith.constant 0 : i32
    %c0_i32_1 = arith.constant 0 : i32
    return %c0_i32, %c0_i32_0 : i32, i32
  }
  func.func @transform_4(%arg0: i32) -> (i32, i32) {
    %c0_i32 = arith.constant 0 : i32
    %c0_i32_0 = arith.constant 0 : i32
    %c0_i32_1 = arith.constant 0 : i32
    return %c0_i32, %c0_i32_0 : i32, i32
  }
  func.func @transform_5(%arg0: i32) -> (i32, i32) {
    %c0_i32 = arith.constant 0 : i32
    %c0_i32_0 = arith.constant 0 : i32
    %c0_i32_1 = arith.constant 0 : i32
    return %c0_i32, %c0_i32_0 : i32, i32
  }
  func.func @transform_6(%arg0: i32) -> (i32, i32) {
    %c0_i32 = arith.constant 0 : i32
    %c0_i32_0 = arith.constant 0 : i32
    %c0_i32_1 = arith.constant 0 : i32
    return %c0_i32, %c0_i32_0 : i32, i32
  }
  func.func @transform_7(%arg0: i32) -> (i32, i32) {
    %c0_i32 = arith.constant 0 : i32
    %c0_i32_0 = arith.constant 0 : i32
    %c0_i32_1 = arith.constant 0 : i32
    return %c0_i32, %c0_i32_0 : i32, i32
  }
  func.func @transform_8(%arg0: i32) -> (i32, i32) {
    %c0_i32 = arith.constant 0 : i32
    %c0_i32_0 = arith.constant 0 : i32
    %c0_i32_1 = arith.constant 0 : i32
    return %c0_i32, %c0_i32_0 : i32, i32
  }
  func.func @transform_9(%arg0: i32) -> (i32, i32) {
    %c0_i32 = arith.constant 0 : i32
    %c0_i32_0 = arith.constant 0 : i32
    return %arg0, %c0_i32 : i32, i32
  }
  func.func @transform_10(%arg0: i32) -> (i32, i32) {
    %c0_i32 = arith.constant 0 : i32
    %c0_i32_0 = arith.constant 0 : i32
    return %arg0, %c0_i32 : i32, i32
  }
}

</mosaic_0001>

<bundles_post_ra>
// kernel: audio_model_forward.1
= control target key start
LH: loop header
LB: loop body
LE: loop exit
PB: predicated region body
PF: predicated region fallthrough
CT: control target
= control target key end

     0   :  { %s2731_s0 = inlined_call_operand.hbm [shape: f32[256,256], index: 0, kind: input, shape index: {}]   ;;  %s2732_s1 = inlined_call_operand.hbm [shape: bf16[256,128], index: 1, kind: input, shape index: {}]   ;;  %s2733_s2 = inlined_call_operand.vmem [shape: f32[1,128], index: 2, kind: input, shape index: {}]   ;;  %s2734_s3 = inlined_call_operand.hbm [shape: bf16[128,128], index: 3, kind: input, shape index: {}]   ;;  %s2735_s4 = inlined_call_operand.vmem [shape: f32[1,128], index: 4, kind: input, shape index: {}]   ;;  %s2736_s5 = inlined_call_operand.hbm [shape: bf16[128,128], index: 5, kind: input, shape index: {}]   ;;  %s2737_s6 = inlined_call_operand.vmem [shape: f32[1,128], index: 6, kind: input, shape index: {}]   ;;  %s2738_s7 = inlined_call_operand.hbm [shape: bf16[128,256], index: 7, kind: input, shape index: {}]   ;;  %s2739_s8 = inlined_call_operand.vmem [shape: f32[1,256], index: 8, kind: input, shape index: {}]   ;;  %s2740_s9 = inlined_call_operand.hbm [shape: f32[256,256], index: 9, kind: output, shape index: {0}]   ;;  %s2741_s10 = inlined_call_operand.vmem [shape: f32[256,32], index: 10, kind: output, shape index: {1}]  }
   0x1   :  { %2748 = sst [smem:[#allocation18_spill]] %s2739_s8 }
   0x2   :  { %2749 = sst [smem:[#allocation19_spill]] %s2740_s9 }
   0x3   :  { %16 = vsyncpa [#allocation3], 0 }
   0x4   :  { %18 = vsyncpa [#allocation3 + $0x1], 0 }
   0x5   :  { %19 = vsyncpa [#allocation6], 0 }
   0x6   :  { %20 = vsyncpa [#allocation9], 0 }
   0x7   :  { %21 = vsyncpa [#allocation4], 0 }
   0x8   :  { %23 = vsyncpa [#allocation4 + $0x1], 0  ;;  %s2253_s13 = smov 0   ;;  %s2255_s14 = smov 0  }
   0x9   :  { %s2257_s15 = smov 0   ;;  %s2259_s16 = smov 0  }
   0xa LB: > { %2750 = sst [smem:[#allocation16_spill]] %s2169_s13  ;;  %s2274_s17 = sadd.s32 4294967295, %s2181_s16   ;;  %s2181_s16 = sphi %s2259_s16, %s2775_s16   ;;  %s2177_s15 = sphi %s2257_s15, %s2774_s15   ;;  %s2173_s14 = sphi %s2255_s14, %s2773_s14   ;;  %s2169_s13 = sphi %s2253_s13, %s2772_s13  }
   0xb   : > { %s1556_s18 = sadd.s32 4294967294, %s2181_s16   ;;  %p49_p0 = scmp.ne.s32.totalorder %s2173_s14, %s2169_s13 }
   0xc   : > { %p2742_p1 = scmp.eq.s32.totalorder %s2274_s17, 0  ;;  %p247_p3 = scmp.eq.s32.totalorder %s1556_s18, 1 }
   0xd   : > { %p1557_p5 = scmp.ge.s32.totalorder %s2181_s16, 1  ;;  %p280_p7 = scmp.lt.s32.totalorder %s2181_s16, 3 }
   0xe   : > { %p2283_p4 = por %p2742_p1, %p49_p0  ;;  %p2288_p6 = por %p247_p3, %p49_p0 }
   0xf   : > { %p2293_p8 = pnand %p1557_p5, %p280_p7  ;;  %s2183_s22 = smov [#allocation5]  }
  0x10   : > { %s2751_s19 = scalar_select %p2283_p4, 1, 0 }
  0x11   : > { %s2752_s20 = scalar_select %p2288_p6, 1, 0 }
  0x12   : > { %s2754_s21 = scalar_select %p2293_p8, 1, 0 }
  0x13   : > { %2753 = sst [smem:[#allocation17_spill]] %s2752_s20  ;;  %s292_s23 = sshll.u32 %s2183_s22, 4  ;;  %s2297_s23 = int_to_ptr.vmem [resolvable:$true] %s292_s23 }
  0x14   : > { %p1833_p9 = pneg %p2293_p8  ;;  %s2184_s25 = smov [#allocation8]  }
  0x15   : > { %s324_s26 = sshll.u32 %s2184_s25, 4  ;;  %s2185_s27 = smov [#allocation7]   ;;  %s2308_s26 = int_to_ptr.vmem [resolvable:$true] %s324_s26 }
  0x16   : > { %p2304_p11 = pnand %p1833_p9, %p2742_p1  ;;  %s2310_s28 = sshll.u32 %s2185_s27, 4  ;;  %s309_s28 = int_to_ptr.vmem [resolvable:$true] %s2310_s28 }
  0x17   : > { %s1965_s11 = scalar_lea.hbm %s2732_s1, 2048 }
  0x18   : > { %p1966_p12 = scmp.ne.s32.totalorder %s2732_s1, %s1965_s11  ;;  %p2320_p13 = pneg %p2304_p11 }
  0x19   : > { %p1972_p5 = scmp.lt.u32.totalorder %s1965_s11, %s2732_s1 }
  0x1a   : > { %p1968_p0 = pnand %p2320_p13, %p1966_p12 }
  0x1c   : > { %p1969_p3 = pneg %p1968_p0 }
  0x1e   : > { %p1974_p7 = pnand %p1972_p5, %p1969_p3 }
  0x20   : > { %1977 = shalt.err (!%p1974_p7)
}
  0x21   : > { %s1978_s29 = scalar_lea.vmem %s2297_s23, 2048  ;;  %p1986_p2 = scmp.lt.s32.totalorder %s2297_s23, %s2297_s23 }
  0x22   : > { %p1979_p9 = scmp.ne.s32.totalorder %s2297_s23, %s1978_s29  ;;  %p1987_p6 = scmp.lt.s32.totalorder %s1978_s29, %s1978_s29 }
  0x24   : > { %p1981_p10 = pnand %p1979_p9, %p2320_p13  ;;  %p1988_p12 = por %p1987_p6, %p1986_p2 }
  0x26   : > { %p1982_p1 = pneg %p1981_p10 }
  0x28   : > { %p1989_p0 = pnand %p1988_p12, %p1982_p1 }
  0x2a   : > { %1992 = shalt.err (!%p1989_p0)
}
  0x2b   : > { %s2186_s30 = smov 64   ;;  %s2187_s11 = smov 4  }
  0x2c   : > { %1836 = dma.hbm_to_vmem [thread:$0]  (!%p2304_p11), %s2732_s1, 2048, %s2297_s23, [#allocation6], %s2186_s30, %s2186_s30, %s2187_s11  }
  0x2d   : > { %s1993_s29 = scalar_lea.hbm %s2736_s5, 1024 }
  0x2e   : > { %p1994_p1 = scmp.ne.s32.totalorder %s2736_s5, %s1993_s29  ;;  %p2000_p10 = scmp.lt.u32.totalorder %s1993_s29, %s2736_s5 }
  0x30   : > { %p1996_p2 = pnand %p1994_p1, %p2320_p13 }
  0x32   : > { %p1997_p6 = pneg %p1996_p2 }
  0x34   : > { %p2002_p3 = pnand %p2000_p10, %p1997_p6 }
  0x36   : > { %2005 = shalt.err (!%p2002_p3)
}
  0x37   : > { %s2006_s23 = scalar_lea.vmem %s2308_s26, 1024  ;;  %p2014_p12 = scmp.lt.s32.totalorder %s2308_s26, %s2308_s26 }
  0x38   : > { %p2007_p5 = scmp.ne.s32.totalorder %s2308_s26, %s2006_s23  ;;  %p2015_p0 = scmp.lt.s32.totalorder %s2006_s23, %s2006_s23 }
  0x3a   : > { %p2009_p7 = pnand %p2007_p5, %p2320_p13  ;;  %p2016_p1 = por %p2015_p0, %p2014_p12 }
  0x3c   : > { %p2010_p9 = pneg %p2009_p7 }
  0x3e   : > { %p2017_p2 = pnand %p2016_p1, %p2010_p9 }
  0x40   : > { %2020 = shalt.err (!%p2017_p2)
}
  0x41   : > { %1842 = dma.hbm_to_vmem [thread:$0]  (!%p2304_p11), %s2736_s5, 1024, %s2308_s26, [#allocation9], %s2186_s30, %s2186_s30, %s2187_s11  }
  0x42   : > { %s2021_s12 = scalar_lea.hbm %s2734_s3, 1024 }
  0x43   : > { %p2022_p6 = scmp.ne.s32.totalorder %s2734_s3, %s2021_s12  ;;  %p2028_p5 = scmp.lt.u32.totalorder %s2021_s12, %s2734_s3 }
  0x45   : > { %p2024_p10 = pnand %p2022_p6, %p2320_p13 }
  0x47   : > { %p2025_p3 = pneg %p2024_p10 }
  0x49   : > { %p2030_p7 = pnand %p2028_p5, %p2025_p3 }
  0x4b   : > { %2033 = shalt.err (!%p2030_p7)
}
  0x4c   : > { %s2034_s23 = scalar_lea.vmem %s309_s28, 1024  ;;  %p2042_p1 = scmp.lt.s32.totalorder %s309_s28, %s309_s28 }
  0x4d   : > { %p2035_p9 = scmp.ne.s32.totalorder %s309_s28, %s2034_s23  ;;  %p2043_p2 = scmp.lt.s32.totalorder %s2034_s23, %s2034_s23 }
  0x4f   : > { %p2037_p12 = pnand %p2035_p9, %p2320_p13  ;;  %p2044_p4 = por %p2043_p2, %p2042_p1 }
  0x51   : > { %p2038_p0 = pneg %p2037_p12 }
  0x53   : > { %p2045_p8 = pnand %p2044_p4, %p2038_p0 }
  0x55   : > { %2048 = shalt.err (!%p2045_p8)
}
  0x56   : > { %1839 = dma.hbm_to_vmem [thread:$0]  (!%p2304_p11), %s2734_s3, 1024, %s309_s28, [#allocation6], %s2186_s30, %s2186_s30, %s2187_s11  }
  0x57   : > { %s2188_s9 = smov [#allocation10]   ;;  %s2049_s18 = scalar_lea.hbm %s2738_s7, 2048 }
  0x58   : > { %s340_s13 = sshll.u32 %s2188_s9, 4  ;;  %p2050_p4 = scmp.ne.s32.totalorder %s2738_s7, %s2049_s18  ;;  %s341_s13 = int_to_ptr.vmem [resolvable:$true] %s340_s13 }
  0x59   : > { %p2056_p10 = scmp.lt.u32.totalorder %s2049_s18, %s2738_s7 }
  0x5a   : > { %p2052_p8 = pnand %p2050_p4, %p2320_p13 }
  0x5c   : > { %p2053_p6 = pneg %p2052_p8 }
  0x5e   : > { %p2058_p3 = pnand %p2056_p10, %p2053_p6 }
  0x60   : > { %2061 = shalt.err (!%p2058_p3)
}
  0x61   : > { %s2062_s28 = scalar_lea.vmem %s341_s13, 2048  ;;  %p2070_p12 = scmp.lt.s32.totalorder %s341_s13, %s341_s13 }
  0x62   : > { %p2063_p5 = scmp.ne.s32.totalorder %s341_s13, %s2062_s28  ;;  %p2071_p0 = scmp.lt.s32.totalorder %s2062_s28, %s2062_s28 }
  0x64   : > { %p2065_p7 = pnand %p2063_p5, %p2320_p13  ;;  %p2072_p1 = por %p2071_p0, %p2070_p12 }
  0x66   : > { %p2066_p9 = pneg %p2065_p7 }
  0x68   : > { %p2073_p2 = pnand %p2072_p1, %p2066_p9 }
  0x6a   : > { %2076 = shalt.err (!%p2073_p2)
}
  0x6b   : > { %s2189_s30 = smov 128   ;;  %s2190_s22 = smov 8  }
  0x6c   : > { %1845 = dma.hbm_to_vmem [thread:$0]  (!%p2304_p11), %s2738_s7, 2048, %s341_s13, [#allocation9], %s2189_s30, %s2189_s30, %s2190_s22  }
  0x6d   : > { %s2411_s8 = sadd.s32 1, %s2181_s16   ;;  %s36_s20 = sadd.s32 1, %s2177_s15 }
  0x6e   : > { %s33_s9 = ssub.s32 %s2181_s16, %s2411_s8  ;;  %p43_p4 = scmp.ne.s32.totalorder %s2177_s15, %s2173_s14 }
  0x6f   : > { %p34_p13 = scmp.eq.s32.totalorder %s33_s9, 0  ;;  %p44_p8 = scmp.eq.s32.totalorder %s2181_s16, 0 }
  0x70   : > { %p2757_p10 = scmp.eq.s32.totalorder %s2274_s17, 1  ;;  %p1858_p5 = scmp.lt.s32.totalorder %s2181_s16, 2 }
  0x71   : > { %s2420_s12 = scalar_select %p34_p13, %s2177_s15, %s36_s20  }
  0x72   : > { %p45_p6 = por %p44_p8, %p43_p4  ;;  %p2424_p3 = por %p2757_p10, %p43_p4 }
  0x73   : > { %s357_s24 = sand.u32 1, %s2177_s15   ;;  %s1634_s13 = sshll.u32 %s2181_s16, 12 }
  0x74   : > { %s1563_s25 = sshll.u32 %s357_s24, 8  ;;  %s2434_s23 = scalar_lea.hbm %s2731_s0, %s1634_s13 }
  0x75   : > { %s361_s28 = scalar_lea.vmem [#allocation2], %s1563_s25  ;;  %p2438_p11 = pnand %p1858_p5, %p45_p6 }
  0x76   : > { %s369_s30 = sshll.u32 %s361_s28, 4  ;;  %s2442_s11 = scalar_lea.sflag [#allocation3], %s357_s24  ;;  %s2436_s30 = int_to_ptr.vmem [resolvable:$true] %s369_s30 }
  0x77   : > { %s2077_s26 = scalar_lea.hbm %s2434_s23, 4096  ;;  %p2079_p9 = pneg %p2438_p11 }
  0x78   : > { %p2078_p7 = scmp.ne.s32.totalorder %s2434_s23, %s2077_s26  ;;  %s2082_s25 = scalar_lea.hbm %s2731_s0, 8192 }
  0x79   : > { %p2083_p1 = scmp.lt.u32.totalorder %s2434_s23, %s2731_s0  ;;  %p2084_p2 = scmp.lt.u32.totalorder %s2082_s25, %s2077_s26 }
  0x7a   : > { %p2080_p12 = pnand %p2079_p9, %p2078_p7  ;;  %p2086_p4 = scmp.lt.u32.totalorder %s2077_s26, %s2434_s23 }
  0x7b   : > { %p2085_p13 = por %p2084_p2, %p2083_p1 }
  0x7c   : > { %p2081_p0 = pneg %p2080_p12 }
  0x7d   : > { %p2087_p8 = por %p2086_p4, %p2085_p13 }
  0x7f   : > { %p2088_p6 = pnand %p2087_p8, %p2081_p0 }
  0x81   : > { %2091 = shalt.err (!%p2088_p6)
}
  0x82   : > { %s2092_s24 = scalar_lea.vmem %s2436_s30, 4096  ;;  %s2191_s29 = smov [#allocation2]  }
  0x83   : > { %p2093_p10 = scmp.ne.s32.totalorder %s2436_s30, %s2092_s24  ;;  %s2097_s28 = sshll.u32 %s2191_s29, 4  ;;  %s2098_s28 = int_to_ptr.vmem [resolvable:$false] %s2097_s28 }
  0x84   : > { %s2099_s9 = scalar_lea.vmem %s2098_s28, 8192  ;;  %p2100_p12 = scmp.lt.s32.totalorder %s2436_s30, %s2098_s28 }
  0x85   : > { %p2095_p5 = pnand %p2093_p10, %p2079_p9  ;;  %p2101_p1 = scmp.lt.s32.totalorder %s2099_s9, %s2092_s24 }
  0x87   : > { %p2096_p7 = pneg %p2095_p5  ;;  %p2102_p2 = por %p2101_p1, %p2100_p12 }
  0x89   : > { %p2103_p13 = pnand %p2102_p2, %p2096_p7 }
  0x8b   : > { %2106 = shalt.err (!%p2103_p13)
}
  0x8c   : > { %s2192_s26 = smov 256   ;;  %s2193_s20 = smov 16  }
  0x8d   : > { %1849 = dma.hbm_to_vmem [thread:$0]  (!%p2438_p11), %s2434_s23, 4096, %s2436_s30, %s2442_s11, %s2192_s26, %s2192_s26, %s2193_s20  }
  0x8e   : > { %p2760_p9 = scmp.ne.s32.totalorder %s2754_s21, 0 }
  0x8f   : > { %s2473_s25 = sand.u32 (!%p2760_p9), 1, %s2173_s14   ;;  %p2761_p0 = scmp.ne.s32.totalorder (!%p2760_p9), %s2751_s19, 0 }
  0x90   : > { %381 = sbr.rel (%p2760_p9) target bundleno = 1152 (0x480), region = 56  ;;  %s1568_s13 = sshll.u32 (!%p2760_p9), %s2473_s25, 8 }
  0x91   : > { %s384_s27 = scalar_lea.sflag (!%p2760_p9), [#allocation3], %s2473_s25  ;;  %s2479_s24 = scalar_lea.vmem (!%p2760_p9), [#allocation2], %s1568_s13 }
  0x97   : > { %2152 = dma.done.wait (%p2761_p0), %s384_s27, 4096  }
  0x98   : > { %2154 = vsyncadd (%p2761_p0), %s384_s27, 4294963200  ;;  %p2762_p11 = scmp.eq.s32.totalorder %s2274_s17, 0 }
  0x9a   : > { %2156 = dma.done.wait (%p2762_p11), [#allocation6], 3072   ;;  %p2763_p4 = pmov %p2762_p11 }
  0x9c   : > { %2158 = vsyncadd (%p2763_p4), [#allocation6], 4294964224  ;;  %p2764_p8 = pmov %p2763_p4 }
  0x9d   : > { %p2765_p6 = pmov %p2763_p4 }
  0x9e   : > { %2160 = dma.done.wait (%p2764_p8), [#allocation9], 3072  }
  0x9f   : > { %2162 = vsyncadd (%p2765_p6), [#allocation9], 4294964224  ;;  %v1909_v0 = vld [vmem:[#allocation5 + $0x40] sm:$0xff]   ;;  %v1911_v2 = vld [vmem:[#allocation5 + $0x48] sm:$0xff]   ;;  %s1574_s23 = sshll.u32 %s2274_s17, 4  ;;  %vm926_vm0 = vcmask 261120  }
  0xa0   : > { %v1910_v1 = vld [vmem:[#allocation5] sm:$0xff]   ;;  %1637 = vmatprep.subr.bf16.mxu0 %v1909_v0  ;;  %1797 = vmatprep.subr.bf16.mxu1 %v1909_v0  ;;  %v1912_v3 = vld [vmem:[#allocation5 + $0x8] sm:$0xff]   ;;  %v1913_v4 = vld [vmem:[#allocation5 + $0x50] sm:$0xff]   ;;  %p448_p10 = scmp.lt.s32.totalorder %s1574_s23, 31  ;;  %s2766_s19 = sld [smem:[#allocation18_spill]] }
  0xa1   : > { %1638 = vmatpush3.bf16.msra.mxu0 %v1910_v1  ;;  %1805 = vmatpush3.bf16.msra.mxu1 %v1910_v1  ;;  %v1914_v5 = vld [vmem:[#allocation5 + $0x10] sm:$0xff]   ;;  %v1915_v6 = vld [vmem:[#allocation5 + $0x58] sm:$0xff]   ;;  %v1917_v8 = vld [vmem:[#allocation5 + $0x60] sm:$0xff]   ;;  %s2616_s21 = scalar_lea.vmem [#allocation11], %s1568_s13  ;;  %s1636_s13 = sshll.u32 %s2274_s17, 12 }
  0xa2   : > { %1639 = vmatprep.subr.bf16.mxu0 %v1911_v2  ;;  %1798 = vmatprep.subr.bf16.mxu1 %v1911_v2  ;;  %v1916_v7 = vld [vmem:[#allocation5 + $0x18] sm:$0xff]   ;;  %v1918_v9 = vld [vmem:[#allocation5 + $0x20] sm:$0xff]   ;;  %v1919_v10 = vld [vmem:[#allocation5 + $0x68] sm:$0xff]   ;;  %s2777_s23 = smov (!%p448_p10, %s1574_s23), 31  ;;  %s2767_s11 = sld [smem:[#allocation19_spill]] }
  0xa3   : > { %v455_v11 = vld [vmem:[%s2479_s24 + $0x8] sm:$0xff]  ;;  %v457_v12 = vld [vmem:[%s2479_s24 + $0x18] sm:$0xff]  ;;  %v1921_v15 = vld [vmem:[#allocation5 + $0x70] sm:$0xff]   ;;  %s1575_s30 = sshll.u32 %s2777_s23, 3  ;;  %s1416_s23 = sshll.u32 %s2616_s21, 4  ;;  %s2683_s23 = int_to_ptr.vmem [resolvable:$true] %s1416_s23 }
  0xa4   : > { %v487_v13 = vpack.c.bf16 %v457_v12, %v455_v11  ;;  %v1920_v14 = vld [vmem:[#allocation5 + $0x28] sm:$0xff]   ;;  %v473_v17 = vld [vmem:[%s2479_s24 + $0x98] sm:$0xff]  ;;  %v1922_v19 = vld [vmem:[#allocation5 + $0x30] sm:$0xff]   ;;  %s2560_s9 = scalar_lea.vmem %s2741_s10, %s1575_s30  ;;  %s1397_s17 = scalar_lea.sflag [#allocation4], %s2473_s25 }
  0xa5   : > { %1640 = vmatpush3.bf16.msra.mxu0 %v1912_v3  ;;  %1806 = vmatpush3.bf16.msra.mxu1 %v1912_v3  ;;  %v471_v16 = vld [vmem:[%s2479_s24 + $0x88] sm:$0xff]  ;;  %v1923_v20 = vld [vmem:[#allocation5 + $0x78] sm:$0xff]   ;;  %v454_v22 = vld [vmem:[%s2479_s24] sm:$0xff]  ;;  %s2107_s28 = scalar_lea.vmem %s2683_s23, 4096 }
  0xa6   : > { %1641 = vmatprep.subr.bf16.mxu0 %v1913_v4  ;;  %1799 = vmatprep.subr.bf16.mxu1 %v1913_v4  ;;  %v495_v18 = vpack.c.bf16 %v473_v17, %v471_v16  ;;  %v1924_v21 = vld [vmem:[#allocation5 + $0x38] sm:$0xff]   ;;  %v456_v23 = vld [vmem:[%s2479_s24 + $0x10] sm:$0xff]  ;;  %v459_v24 = vld [vmem:[%s2479_s24 + $0x28] sm:$0xff]  ;;  %p2108_p5 = scmp.ne.s32.totalorder %s2683_s23, %s2107_s28 }
  0xa7   : > { %669 = vmatprep.mubr.bf16.mxu0 %v487_v13  ;;  %v461_v25 = vld [vmem:[%s2479_s24 + $0x38] sm:$0xff]  ;;  %v470_v26 = vld [vmem:[%s2479_s24 + $0x80] sm:$0xff]  ;;  %v472_v27 = vld [vmem:[%s2479_s24 + $0x90] sm:$0xff]  ;;  %v486_v31 = vpack.c.bf16 %v456_v23, %v454_v22 }
  0xa8   : > { %701 = vmatprep.mubr.bf16.mxu1 %v495_v18  ;;  %v475_v28 = vld [vmem:[%s2479_s24 + $0xa8] sm:$0xff]  ;;  %v477_v29 = vld [vmem:[%s2479_s24 + $0xb8] sm:$0xff]  ;;  %v1925_v30 = vld [vmem:[#allocation7] sm:$0xff]   ;;  %v489_v32 = vpack.c.bf16 %v461_v25, %v459_v24  ;;  %v494_v33 = vpack.c.bf16 %v472_v27, %v470_v26  ;;  %s2681_s29 = scalar_lea.hbm %s2767_s11, %s1636_s13  ;;  %p2109_p7 = pnand %p2108_p5, %p2424_p3 }
  0xa9   : > { %1642 = vmatpush3.bf16.msra.mxu0 %v1914_v5  ;;  %1807 = vmatpush3.bf16.msra.mxu1 %v1914_v5  ;;  %v1926_v34 = vld [vmem:[#allocation7 + $0x8] sm:$0xff]   ;;  %v497_v35 = vpack.c.bf16 %v477_v29, %v475_v28  ;;  %v458_v36 = vld [vmem:[%s2479_s24 + $0x20] sm:$0xff]  ;;  %v460_v37 = vld [vmem:[%s2479_s24 + $0x30] sm:$0xff] }
  0xaa   : > { %1643 = vmatprep.subr.bf16.mxu0 %v1915_v6  ;;  %1800 = vmatprep.subr.bf16.mxu1 %v1915_v6  ;;  %v463_v38 = vld [vmem:[%s2479_s24 + $0x48] sm:$0xff]  ;;  %v465_v39 = vld [vmem:[%s2479_s24 + $0x58] sm:$0xff]  ;;  %v474_v40 = vld [vmem:[%s2479_s24 + $0xa0] sm:$0xff]  ;;  %v488_v45 = vpack.c.bf16 %v460_v37, %v458_v36  ;;  %p2110_p12 = pneg %p2109_p7 }
  0xab   : > { %v476_v41 = vld [vmem:[%s2479_s24 + $0xb0] sm:$0xff]  ;;  %v479_v42 = vld [vmem:[%s2479_s24 + $0xc8] sm:$0xff]  ;;  %v481_v43 = vld [vmem:[%s2479_s24 + $0xd8] sm:$0xff]  ;;  %v491_v46 = vpack.c.bf16 %v465_v39, %v463_v38 }
  0xac   : > { %v1927_v44 = vld [vmem:[#allocation7 + $0x10] sm:$0xff]   ;;  %v496_v47 = vpack.c.bf16 %v476_v41, %v474_v40  ;;  %v1928_v48 = vld [vmem:[#allocation7 + $0x18] sm:$0xff]   ;;  %v499_v49 = vpack.c.bf16 %v481_v43, %v479_v42  ;;  %v462_v50 = vld [vmem:[%s2479_s24 + $0x40] sm:$0xff] }
  0xad   : > { %1644 = vmatpush3.bf16.msra.mxu0 %v1916_v7  ;;  %1808 = vmatpush3.bf16.msra.mxu1 %v1916_v7  ;;  %v464_v51 = vld [vmem:[%s2479_s24 + $0x50] sm:$0xff]  ;;  %v467_v52 = vld [vmem:[%s2479_s24 + $0x68] sm:$0xff]  ;;  %v469_v53 = vld [vmem:[%s2479_s24 + $0x78] sm:$0xff] }
  0xae   : > { %1645 = vmatprep.subr.bf16.mxu0 %v1917_v8  ;;  %1801 = vmatprep.subr.bf16.mxu1 %v1917_v8  ;;  %v478_v54 = vld [vmem:[%s2479_s24 + $0xc0] sm:$0xff]  ;;  %v480_v55 = vld [vmem:[%s2479_s24 + $0xd0] sm:$0xff]  ;;  %v483_v56 = vld [vmem:[%s2479_s24 + $0xe8] sm:$0xff]  ;;  %v490_v58 = vpack.c.bf16 %v464_v51, %v462_v50  ;;  %v493_v59 = vpack.c.bf16 %v469_v53, %v467_v52 }
  0xaf   : > { %v485_v57 = vld [vmem:[%s2479_s24 + $0xf8] sm:$0xff]  ;;  %v498_v60 = vpack.c.bf16 %v480_v55, %v478_v54  ;;  %v466_v62 = vld [vmem:[%s2479_s24 + $0x60] sm:$0xff]  ;;  %v468_v63 = vld [vmem:[%s2479_s24 + $0x70] sm:$0xff] }
  0xb0   : > { %v501_v61 = vpack.c.bf16 %v485_v57, %v483_v56  ;;  %v482_v0 = vld [vmem:[%s2479_s24 + $0xe0] sm:$0xff]  ;;  %v484_v1 = vld [vmem:[%s2479_s24 + $0xf0] sm:$0xff]  ;;  %v492_v2 = vpack.c.bf16 %v468_v63, %v466_v62  ;;  %v1930_v5 = vld [vmem:[#allocation7 + $0x28] sm:$0xff]  }
  0xb1   : > { %1646 = vmatpush3.bf16.msra.mxu0 %v1918_v9  ;;  %1809 = vmatpush3.bf16.msra.mxu1 %v1918_v9  ;;  %v500_v3 = vpack.c.bf16 %v484_v1, %v482_v0  ;;  %v1929_v4 = vld [vmem:[#allocation7 + $0x20] sm:$0xff]   ;;  %v1931_v6 = vld [vmem:[#allocation7 + $0x30] sm:$0xff]   ;;  %v1932_v7 = vld [vmem:[#allocation7 + $0x38] sm:$0xff]  }
  0xb2   : > { %1647 = vmatprep.subr.bf16.mxu0 %v1919_v10  ;;  %1802 = vmatprep.subr.bf16.mxu1 %v1919_v10  ;;  %v2525_v8 = vld [vmem:[#allocation8] sm:$0xff]  }
  0xb3   : > { %v2531_v10 = vld [vmem:[%s2733_s2] ss:$0 sm:$0xff] }
  0xb5   : > { %1648 = vmatpush3.bf16.msra.mxu0 %v1920_v14  ;;  %1810 = vmatpush3.bf16.msra.mxu1 %v1920_v14 }
  0xb6   : > { %1649 = vmatprep.subr.bf16.mxu0 %v1921_v15  ;;  %1803 = vmatprep.subr.bf16.mxu1 %v1921_v15 }
  0xb9   : > { %1650 = vmatpush3.bf16.msra.mxu0 %v1922_v19  ;;  %1811 = vmatpush3.bf16.msra.mxu1 %v1922_v19 }
  0xba   : > { %1651 = vmatprep.subr.bf16.mxu0 %v1923_v20  ;;  %1804 = vmatprep.subr.bf16.mxu1 %v1923_v20 }
  0xbd   : > { %1652 = vmatpush3.bf16.msra.mxu0 %v1924_v21  ;;  %1812 = vmatpush3.bf16.msra.mxu1 %v1924_v21 }
  0xbe   : > { %1733 = vmatprep.subr.bf16.mxu1 %v1925_v30 }
  0xc0   : > { %670 = vmatmul.mubr.bf16.vlgmr.msra.gmra.mrb[0].mxu0 %v486_v31  ;;  %702 = vmatmul.mubr.bf16.vlgmr.msra.gmra.mrb[0].mxu1 %v494_v33 }
  0xc1   : > { %677 = vmatprep.mubr.bf16.mxu0 %v489_v32  ;;  %709 = vmatprep.mubr.bf16.mxu1 %v497_v35 }
  0xc2   : > { %1734 = vmatpush3.bf16.msra.mxu1 %v1925_v30 }
  0xc3   : > { %1735 = vmatprep.subr.bf16.mxu1 %v1926_v34 }
  0xc6   : > { %1736 = vmatpush3.bf16.msra.mxu1 %v1926_v34 }
  0xc7   : > { %1737 = vmatprep.subr.bf16.mxu1 %v1927_v44 }
  0xc8   : > { %678 = vmatmul.mubr.bf16.gmra.mrb[4].mxu0 %v488_v45  ;;  %710 = vmatmul.mubr.bf16.gmra.mrb[4].mxu1 %v496_v47 }
  0xc9   : > { %685 = vmatprep.mubr.bf16.mxu0 %v491_v46  ;;  %717 = vmatprep.mubr.bf16.mxu1 %v499_v49 }
  0xca   : > { %1738 = vmatpush3.bf16.msra.mxu1 %v1927_v44 }
  0xcb   : > { %1739 = vmatprep.subr.bf16.mxu1 %v1928_v48 }
  0xce   : > { %1740 = vmatpush3.bf16.msra.mxu1 %v1928_v48 }
  0xcf   : > { %1741 = vmatprep.subr.bf16.mxu1 %v1929_v4 }
  0xd0   : > { %686 = vmatmul.mubr.bf16.gmra.mrb[8].mxu0 %v490_v58  ;;  %718 = vmatmul.mubr.bf16.gmra.mrb[8].mxu1 %v498_v60 }
  0xd1   : > { %693 = vmatprep.mubr.bf16.mxu0 %v493_v59  ;;  %725 = vmatprep.mubr.bf16.mxu1 %v501_v61  ;;  %v1934_v59 = vld [vmem:[#allocation8 + $0x8] sm:$0xff]  }
  0xd2   : > { %1742 = vmatpush3.bf16.msra.mxu1 %v1929_v4 }
  0xd3   : > { %1743 = vmatprep.subr.bf16.mxu1 %v1930_v5 }
  0xd6   : > { %1744 = vmatpush3.bf16.msra.mxu1 %v1930_v5 }
  0xd7   : > { %1745 = vmatprep.subr.bf16.mxu1 %v1931_v6 }
  0xd8   : > { %694 = vmatmul.mubr.bf16.gmra.mrb[12].mxu0 %v492_v2  ;;  %726 = vmatmul.mubr.bf16.gmra.mrb[12].mxu1 %v500_v3 }
  0xda   : > { %1746 = vmatpush3.bf16.msra.mxu1 %v1931_v6  ;;  %v1935_v6 = vld [vmem:[#allocation8 + $0x10] sm:$0xff]  }
  0xdb   : > { %1747 = vmatprep.subr.bf16.mxu1 %v1932_v7 }
  0xde   : > { %1748 = vmatpush3.bf16.msra.mxu1 %v1932_v7 }
  0xdf   : > { %1765 = vmatprep.subr.bf16.mxu1 %v2525_v8 }
 0x193   : > { %v1653_v9 = vpop.f32.mrb[0].mxu0  ;;  %v1677_v12 = vpop.f32.mrb[0].mxu1 }
 0x194   : > { %v1654_v11 = vpop.f32.mrb[1].mxu0  ;;  %v1678_v15 = vpop.f32.mrb[1].mxu1 }
 0x195   : > { %v1655_v13 = vadd.f32 %v1654_v11, %v1653_v9  ;;  %v1656_v14 = vpop.f32.mrb[2].mxu0  ;;  %v1679_v17 = vadd.f32 %v1678_v15, %v1677_v12  ;;  %v1680_v18 = vpop.f32.mrb[2].mxu1 }
 0x196   : > { %v1657_v16 = vpop.f32.mrb[3].mxu0  ;;  %v1681_v21 = vpop.f32.mrb[3].mxu1 }
 0x197   : > { %v672_v19 = vadd.f32 %v1655_v13, %v2531_v10  ;;  %v1658_v20 = vadd.f32 %v1657_v16, %v1656_v14  ;;  %v704_v22 = vadd.f32 %v1679_v17, %v2531_v10  ;;  %v1682_v23 = vadd.f32 %v1681_v21, %v1680_v18 }
 0x199   : > { %v675_v24 = vadd.f32 %v1658_v20, %v2531_v10  ;;  %v742_v25 = vmax.f32 %v704_v22, 0.0  ;;  %v707_v26 = vadd.f32 %v1682_v23, %v2531_v10  ;;  %v734_v27 = vmax.f32 %v672_v19, 0.0 }
 0x19b   : > { %v735_v28 = vmax.f32 %v675_v24, 0.0  ;;  %v1659_v29 = vpop.f32.mrb[4].mxu0  ;;  %v743_v31 = vmax.f32 %v707_v26, 0.0  ;;  %v1683_v32 = vpop.f32.mrb[4].mxu1 }
 0x19c   : > { %v1660_v30 = vpop.f32.mrb[5].mxu0  ;;  %v1684_v36 = vpop.f32.mrb[5].mxu1 }
 0x19d   : > { %v1661_v33 = vadd.f32 %v1660_v30, %v1659_v29  ;;  %v1662_v34 = vpop.f32.mrb[6].mxu0  ;;  %v750_v35 = vpack.c.bf16 %v735_v28, %v734_v27  ;;  %v1685_v38 = vadd.f32 %v1684_v36, %v1683_v32  ;;  %v1686_v39 = vpop.f32.mrb[6].mxu1  ;;  %v2537_v40 = vpack.c.bf16 %v743_v31, %v742_v25  ;;  %v1937_v31 = vld [vmem:[#allocation8 + $0x20] sm:$0xff]  }
 0x19e   : > { %v1663_v37 = vpop.f32.mrb[7].mxu0  ;;  %v1687_v43 = vpop.f32.mrb[7].mxu1 }
 0x19f   : > { %v680_v41 = vadd.f32 %v1661_v33, %v2531_v10  ;;  %v1664_v42 = vadd.f32 %v1663_v37, %v1662_v34  ;;  %1749 = vmatprep.mubr.bf16.mxu1 %v750_v35  ;;  %v712_v44 = vadd.f32 %v1685_v38, %v2531_v10  ;;  %v1688_v45 = vadd.f32 %v1687_v43, %v1686_v39  ;;  %v1938_v38 = vld [vmem:[#allocation8 + $0x28] sm:$0xff]  }
 0x1a0   : > { %v1943_v43 = vld [vmem:[#allocation10 + $0x4] ss:$8 sps:$4 sm:$0xff]  }
 0x1a1   : > { %v683_v46 = vadd.f32 %v1664_v42, %v2531_v10  ;;  %v744_v47 = vmax.f32 %v712_v44, 0.0  ;;  %v715_v48 = vadd.f32 %v1688_v45, %v2531_v10  ;;  %v736_v49 = vmax.f32 %v680_v41, 0.0  ;;  %v1939_v41 = vld [vmem:[#allocation8 + $0x30] sm:$0xff]   ;;  %v1941_v42 = vld [vmem:[#allocation10] ss:$8 sps:$4 sm:$0xff]   ;;  %1251 = vmatprep.subr.bf16.mxu0 %v1943_v43 }
 0x1a2   : > { %v1946_v44 = vld [vmem:[#allocation10 + $0x14] ss:$8 sps:$4 sm:$0xff]   ;;  %1252 = vmatpush1.bf16.msra.mxu0 %v1941_v42  ;;  %v1944_v45 = vld [vmem:[#allocation10 + $0x10] ss:$8 sps:$4 sm:$0xff]  }
 0x1a3   : > { %v737_v50 = vmax.f32 %v683_v46, 0.0  ;;  %v1665_v51 = vpop.f32.mrb[8].mxu0  ;;  %v745_v53 = vmax.f32 %v715_v48, 0.0  ;;  %v1689_v54 = vpop.f32.mrb[8].mxu1  ;;  %1253 = vmatprep.subr.bf16.mxu0 %v1946_v44  ;;  %v1947_v46 = vld [vmem:[#allocation10 + $0x20] ss:$8 sps:$4 sm:$0xff]  }
 0x1a4   : > { %v1666_v52 = vpop.f32.mrb[9].mxu0  ;;  %v1690_v58 = vpop.f32.mrb[9].mxu1  ;;  %v1950_v48 = vld [vmem:[#allocation10 + $0x30] ss:$8 sps:$4 sm:$0xff]  }
 0x1a5   : > { %v751_v55 = vpack.c.bf16 %v737_v50, %v736_v49  ;;  %v1667_v56 = vadd.f32 %v1666_v52, %v1665_v51  ;;  %v1668_v57 = vpop.f32.mrb[10].mxu0  ;;  %v1691_v61 = vadd.f32 %v1690_v58, %v1689_v54  ;;  %v1692_v62 = vpop.f32.mrb[10].mxu1  ;;  %v755_v63 = vpack.c.bf16 %v745_v53, %v744_v47  ;;  %v1952_v47 = vld [vmem:[#allocation10 + $0x34] ss:$8 sps:$4 sm:$0xff]   ;;  %v1955_v49 = vld [vmem:[#allocation10 + $0x44] ss:$8 sps:$4 sm:$0xff]  }
 0x1a6   : > { %v1669_v60 = vpop.f32.mrb[11].mxu0  ;;  %v1693_v2 = vpop.f32.mrb[11].mxu1  ;;  %1254 = vmatpush1.bf16.msra.mxu0 %v1944_v45  ;;  %v1953_v50 = vld [vmem:[#allocation10 + $0x40] ss:$8 sps:$4 sm:$0xff]   ;;  %v1958_v51 = vld [vmem:[#allocation10 + $0x54] ss:$8 sps:$4 sm:$0xff]  }
 0x1a7   : > { %v688_v0 = vadd.f32 %v1667_v56, %v2531_v10  ;;  %v1670_v1 = vadd.f32 %v1669_v60, %v1668_v57  ;;  %1750 = vmatmul.mubr.bf16.vlgmr.msra.gmra.mrb[16].mxu1 %v751_v55  ;;  %v720_v3 = vadd.f32 %v1691_v61, %v2531_v10  ;;  %v1694_v4 = vadd.f32 %v1693_v2, %v1692_v62  ;;  %v1956_v52 = vld [vmem:[#allocation10 + $0x50] ss:$8 sps:$4 sm:$0xff]   ;;  %v1593_v53 = vld [vmem:[%s2735_s4] ss:$0 sm:$0xff] }
 0x1a8   : > { %1766 = vmatpush3.bf16.msra.mxu1 %v2525_v8  ;;  %v1936_v8 = vld [vmem:[#allocation8 + $0x18] sm:$0xff]  }
 0x1a9   : > { %v691_v5 = vadd.f32 %v1670_v1, %v2531_v10  ;;  %1767 = vmatprep.subr.bf16.mxu1 %v1934_v59  ;;  %v746_v7 = vmax.f32 %v720_v3, 0.0  ;;  %v723_v9 = vadd.f32 %v1694_v4, %v2531_v10  ;;  %v738_v11 = vmax.f32 %v688_v0, 0.0 }
 0x1ab   : > { %v739_v12 = vmax.f32 %v691_v5, 0.0  ;;  %v1671_v13 = vpop.f32.mrb[12].mxu0  ;;  %v747_v15 = vmax.f32 %v723_v9, 0.0  ;;  %v1695_v16 = vpop.f32.mrb[12].mxu1 }
 0x1ac   : > { %v1672_v14 = vpop.f32.mrb[13].mxu0  ;;  %1768 = vmatpush3.bf16.msra.mxu1 %v1934_v59  ;;  %v1696_v20 = vpop.f32.mrb[13].mxu1 }
 0x1ad   : > { %v1673_v17 = vadd.f32 %v1672_v14, %v1671_v13  ;;  %v1674_v18 = vpop.f32.mrb[14].mxu0  ;;  %v752_v19 = vpack.c.bf16 %v739_v12, %v738_v11  ;;  %1769 = vmatprep.subr.bf16.mxu1 %v1935_v6  ;;  %v1697_v22 = vadd.f32 %v1696_v20, %v1695_v16  ;;  %v1698_v23 = vpop.f32.mrb[14].mxu1  ;;  %v756_v24 = vpack.c.bf16 %v747_v15, %v746_v7 }
 0x1ae   : > { %v1675_v21 = vpop.f32.mrb[15].mxu0  ;;  %v1699_v27 = vpop.f32.mrb[15].mxu1 }
 0x1af   : > { %v696_v25 = vadd.f32 %v1673_v17, %v2531_v10  ;;  %v1676_v26 = vadd.f32 %v1675_v21, %v1674_v18  ;;  %1753 = vmatprep.mubr.bf16.mxu1 %v752_v19  ;;  %v728_v28 = vadd.f32 %v1697_v22, %v2531_v10  ;;  %v1700_v29 = vadd.f32 %v1699_v27, %v1698_v23 }
 0x1b0   : > { %1770 = vmatpush3.bf16.msra.mxu1 %v1935_v6 }
 0x1b1   : > { %v699_v30 = vadd.f32 %v1676_v26, %v2531_v10  ;;  %1771 = vmatprep.subr.bf16.mxu1 %v1936_v8  ;;  %v748_v32 = vmax.f32 %v728_v28, 0.0  ;;  %v731_v33 = vadd.f32 %v1700_v29, %v2531_v10  ;;  %v740_v34 = vmax.f32 %v696_v25, 0.0  ;;  %v1940_v10 = vld [vmem:[#allocation8 + $0x38] sm:$0xff]  }
 0x1b3   : > { %v741_v35 = vmax.f32 %v699_v30, 0.0  ;;  %v749_v36 = vmax.f32 %v731_v33, 0.0  ;;  %v1964_v33 = vld [vmem:[#allocation10 + $0x74] ss:$8 sps:$4 sm:$0xff]  }
 0x1b4   : > { %1772 = vmatpush3.bf16.msra.mxu1 %v1936_v8 }
 0x1b5   : > { %v753_v37 = vpack.c.bf16 %v741_v35, %v740_v34  ;;  %1773 = vmatprep.subr.bf16.mxu1 %v1937_v31  ;;  %v757_v39 = vpack.c.bf16 %v749_v36, %v748_v32  ;;  %v1959_v32 = vld [vmem:[#allocation10 + $0x60] ss:$8 sps:$4 sm:$0xff]   ;;  %v1962_v34 = vld [vmem:[#allocation10 + $0x70] ss:$8 sps:$4 sm:$0xff]   ;;  %v2194_v35 = vmov 0  }
 0x1b6   : > { %1283 = vmatprep.mubr.bf16.mxu0 %v2194_v35  ;;  %v1602_v36 = vld [vmem:[%s2737_s6] ss:$0 sm:$0xff] }
 0x1b7   : > { %1754 = vmatmul.mubr.bf16.gmra.mrb[20].mxu1 %v753_v37 }
 0x1b8   : > { %1757 = vmatprep.mubr.bf16.mxu1 %v2537_v40  ;;  %1774 = vmatpush3.bf16.msra.mxu1 %v1937_v31  ;;  %v1949_v40 = vld [vmem:[#allocation10 + $0x24] ss:$8 sps:$4 sm:$0xff]  }
 0x1b9   : > { %1775 = vmatprep.subr.bf16.mxu1 %v1938_v38  ;;  %1255 = vmatprep.subr.bf16.mxu0 %v1949_v40  ;;  %v1961_v31 = vld [vmem:[#allocation10 + $0x64] ss:$8 sps:$4 sm:$0xff]  }
 0x1ba   : > { %1256 = vmatpush1.bf16.msra.mxu0 %v1947_v46 }
 0x1bb   : > { %1257 = vmatprep.subr.bf16.mxu0 %v1952_v47 }
 0x1bc   : > { %1776 = vmatpush3.bf16.msra.mxu1 %v1938_v38 }
 0x1bd   : > { %1777 = vmatprep.subr.bf16.mxu1 %v1939_v41 }
 0x1be   : > { %1258 = vmatpush1.bf16.msra.mxu0 %v1950_v48 }
 0x1bf   : > { %1758 = vmatmul.mubr.bf16.gmra.mrb[24].mxu1 %v755_v63  ;;  %1259 = vmatprep.subr.bf16.mxu0 %v1955_v49 }
 0x1c0   : > { %1761 = vmatprep.mubr.bf16.mxu1 %v756_v24  ;;  %1778 = vmatpush3.bf16.msra.mxu1 %v1939_v41 }
 0x1c1   : > { %1779 = vmatprep.subr.bf16.mxu1 %v1940_v10 }
 0x1c2   : > { %1260 = vmatpush1.bf16.msra.mxu0 %v1953_v50 }
 0x1c3   : > { %1261 = vmatprep.subr.bf16.mxu0 %v1958_v51 }
 0x1c4   : > { %1780 = vmatpush3.bf16.msra.mxu1 %v1940_v10 }
 0x1c6   : > { %1262 = vmatpush1.bf16.msra.mxu0 %v1956_v52 }
 0x1c7   : > { %1762 = vmatmul.mubr.bf16.gmra.mrb[28].mxu1 %v757_v39  ;;  %1263 = vmatprep.subr.bf16.mxu0 %v1961_v31 }
 0x1ca   : > { %1264 = vmatpush1.bf16.msra.mxu0 %v1959_v32  ;;  %v1159_v32 = vld [vmem:[%s2766_s19] sm:$0x3] }
 0x1cb   : > { %1265 = vmatprep.subr.bf16.mxu0 %v1964_v33 }
 0x1ce   : > { %1266 = vmatpush1.bf16.msra.mxu0 %v1962_v34 }
 0x27a   : > { %v1751_v54 = vpop.f32.mrb[16].mxu1 }
 0x27b   : > { %v872_v55 = vadd.f32 %v1751_v54, %v1593_v53  ;;  %v863_v56 = vpop.f32.mrb[17].mxu1 }
 0x27c   : > { %v864_v57 = vadd.f32 %v1593_v53, %v863_v56  ;;  %v1752_v58 = vpop.f32.mrb[18].mxu1 }
 0x27d   : > { %929 = vst.msk [vmem:[%s2560_s9 + $0x10] sm:$0xff] %vm926_vm0, %v872_v55  ;;  %v875_v59 = vadd.f32 %v1752_v58, %v1593_v53  ;;  %v866_v60 = vpop.f32.mrb[19].mxu1 }
 0x27e   : > { %927 = vst.msk [vmem:[%s2560_s9] sm:$0xff] %vm926_vm0, %v864_v57  ;;  %v867_v61 = vadd.f32 %v1593_v53, %v866_v60 }
 0x27f   : > { %930 = vst.msk [vmem:[%s2560_s9 + $0x18] sm:$0xff] %vm926_vm0, %v875_v59  ;;  %v944_v62 = vpack.c.bf16 %v875_v59, %v872_v55 }
 0x280   : > { %928 = vst.msk [vmem:[%s2560_s9 + $0x8] sm:$0xff] %vm926_vm0, %v867_v61  ;;  %v943_v63 = vpack.c.bf16 %v867_v61, %v864_v57 }
 0x282   : > { %1781 = vmatprep.mubr.bf16.mxu1 %v943_v63 }
 0x283   : > { %1782 = vmatmul.mubr.bf16.vlgmr.msra.gmra.mrb[32].mxu1 %v944_v62 }
 0x28a   : > { %v1755_v0 = vpop.f32.mrb[20].mxu1 }
 0x28b   : > { %v888_v1 = vadd.f32 %v1755_v0, %v1593_v53  ;;  %v879_v2 = vpop.f32.mrb[21].mxu1 }
 0x28c   : > { %v880_v3 = vadd.f32 %v1593_v53, %v879_v2  ;;  %v1756_v4 = vpop.f32.mrb[22].mxu1 }
 0x28d   : > { %933 = vst.msk [vmem:[%s2560_s9 + $0x30] sm:$0xff] %vm926_vm0, %v888_v1  ;;  %v891_v5 = vadd.f32 %v1756_v4, %v1593_v53  ;;  %v882_v6 = vpop.f32.mrb[23].mxu1 }
 0x28e   : > { %931 = vst.msk [vmem:[%s2560_s9 + $0x20] sm:$0xff] %vm926_vm0, %v880_v3  ;;  %v883_v7 = vadd.f32 %v1593_v53, %v882_v6 }
 0x28f   : > { %934 = vst.msk [vmem:[%s2560_s9 + $0x38] sm:$0xff] %vm926_vm0, %v891_v5  ;;  %v946_v9 = vpack.c.bf16 %v891_v5, %v888_v1 }
 0x290   : > { %932 = vst.msk [vmem:[%s2560_s9 + $0x28] sm:$0xff] %vm926_vm0, %v883_v7  ;;  %v945_v11 = vpack.c.bf16 %v883_v7, %v880_v3 }
 0x292   : > { %v1759_v12 = vpop.f32.mrb[24].mxu1  ;;  %1785 = vmatprep.mubr.bf16.mxu1 %v945_v11 }
 0x293   : > { %v904_v13 = vadd.f32 %v1759_v12, %v1593_v53  ;;  %v895_v14 = vpop.f32.mrb[25].mxu1  ;;  %1786 = vmatmul.mubr.bf16.gmra.mrb[36].mxu1 %v946_v9 }
 0x294   : > { %v896_v15 = vadd.f32 %v1593_v53, %v895_v14  ;;  %v1760_v16 = vpop.f32.mrb[26].mxu1 }
 0x295   : > { %937 = vst.msk [vmem:[%s2560_s9 + $0x50] sm:$0xff] %vm926_vm0, %v904_v13  ;;  %v907_v17 = vadd.f32 %v1760_v16, %v1593_v53  ;;  %v898_v18 = vpop.f32.mrb[27].mxu1 }
 0x296   : > { %935 = vst.msk [vmem:[%s2560_s9 + $0x40] sm:$0xff] %vm926_vm0, %v896_v15  ;;  %v899_v19 = vadd.f32 %v1593_v53, %v898_v18 }
 0x297   : > { %938 = vst.msk [vmem:[%s2560_s9 + $0x58] sm:$0xff] %vm926_vm0, %v907_v17  ;;  %v948_v20 = vpack.c.bf16 %v907_v17, %v904_v13 }
 0x298   : > { %936 = vst.msk [vmem:[%s2560_s9 + $0x48] sm:$0xff] %vm926_vm0, %v899_v19  ;;  %v947_v8 = vpack.c.bf16 %v899_v19, %v896_v15 }
 0x29a   : > { %1789 = vmatprep.mubr.bf16.mxu1 %v947_v8  ;;  %v1763_v21 = vpop.f32.mrb[28].mxu1 }
 0x29b   : > { %1790 = vmatmul.mubr.bf16.gmra.mrb[40].mxu1 %v948_v20  ;;  %v920_v22 = vadd.f32 %v1763_v21, %v1593_v53  ;;  %v911_v23 = vpop.f32.mrb[29].mxu1 }
 0x29c   : > { %v912_v24 = vadd.f32 %v1593_v53, %v911_v23  ;;  %v1764_v25 = vpop.f32.mrb[30].mxu1 }
 0x29d   : > { %941 = vst.msk [vmem:[%s2560_s9 + $0x70] sm:$0xff] %vm926_vm0, %v920_v22  ;;  %v923_v26 = vadd.f32 %v1764_v25, %v1593_v53  ;;  %v914_v27 = vpop.f32.mrb[31].mxu1 }
 0x29e   : > { %939 = vst.msk [vmem:[%s2560_s9 + $0x60] sm:$0xff] %vm926_vm0, %v912_v24  ;;  %v915_v28 = vadd.f32 %v1593_v53, %v914_v27 }
 0x29f   : > { %942 = vst.msk [vmem:[%s2560_s9 + $0x78] sm:$0xff] %vm926_vm0, %v923_v26  ;;  %v950_v29 = vpack.c.bf16 %v923_v26, %v920_v22 }
 0x2a0   : > { %940 = vst.msk [vmem:[%s2560_s9 + $0x68] sm:$0xff] %vm926_vm0, %v915_v28  ;;  %v949_v30 = vpack.c.bf16 %v915_v28, %v912_v24  ;;  %s2195_s9 = smov [#allocation11]  }
 0x2a1   : > { %s2111_s26 = sshll.u32 %s2195_s9, 4  ;;  %s2112_s26 = int_to_ptr.vmem [resolvable:$false] %s2111_s26 }
 0x2a2   : > { %1793 = vmatprep.mubr.bf16.mxu1 %v949_v30  ;;  %s2113_s20 = scalar_lea.vmem %s2112_s26, 8192  ;;  %p2114_p1 = scmp.lt.s32.totalorder %s2683_s23, %s2112_s26 }
 0x2a3   : > { %1794 = vmatmul.mubr.bf16.gmra.mrb[44].mxu1 %v950_v29  ;;  %v1161_v29 = vlaneseq  ;;  %p2115_p2 = scmp.lt.s32.totalorder %s2113_s20, %s2107_s28 }
 0x2a5   : > { %v1162_v30 = vshrl.u32 %v1161_v29, 7  ;;  %p2116_p13 = por %p2115_p2, %p2114_p1 }
 0x2a7   : > { %v1163_v31 = vsub.s32 0, %v1162_v30  ;;  %v1167_v33 = vsub.s32 1, %v1162_v30  ;;  %p2117_p9 = pnand %p2116_p13, %p2110_p12 }
 0x2a9   : > { %v2608_v34 = vrot.slane %v1159_v32, %v1163_v31 }
 0x356   : > { %v1783_v37 = vpop.f32.mrb[32].mxu1 }
 0x357   : > { %v1065_v38 = vadd.f32 %v1783_v37, %v1602_v36  ;;  %v1056_v39 = vpop.f32.mrb[33].mxu1 }
 0x358   : > { %v1057_v41 = vadd.f32 %v1602_v36, %v1056_v39  ;;  %v1784_v10 = vpop.f32.mrb[34].mxu1 }
 0x359   : > { %v1068_v42 = vadd.f32 %v1784_v10, %v1602_v36  ;;  %v1059_v43 = vpop.f32.mrb[35].mxu1  ;;  %v1121_v45 = vmax.f32 %v1065_v38, 0.0 }
 0x35a   : > { %v1060_v44 = vadd.f32 %v1602_v36, %v1059_v43  ;;  %v1119_v46 = vmax.f32 %v1057_v41, 0.0 }
 0x35b   : > { %v1122_v40 = vmax.f32 %v1068_v42, 0.0 }
 0x35c   : > { %v1120_v47 = vmax.f32 %v1060_v44, 0.0 }
 0x35d   : > { %v1136_v48 = vpack.c.bf16 %v1122_v40, %v1121_v45 }
 0x35e   : > { %v1135_v49 = vpack.c.bf16 %v1120_v47, %v1119_v46 }
 0x360   : > { %1284 = vmatmul.mubr.bf16.vlgmr.msra.gmra.mrb[16].mxu0 %v1135_v49 }
 0x361   : > { %1293 = vmatprep.mubr.bf16.mxu0 %v2194_v35 }
 0x366   : > { %v1787_v50 = vpop.f32.mrb[36].mxu1 }
 0x367   : > { %v1081_v51 = vadd.f32 %v1787_v50, %v1602_v36  ;;  %v1072_v52 = vpop.f32.mrb[37].mxu1 }
 0x368   : > { %v1073_v53 = vadd.f32 %v1602_v36, %v1072_v52  ;;  %v1788_v54 = vpop.f32.mrb[38].mxu1  ;;  %1294 = vmatmul.mubr.bf16.gmra.mrb[20].mxu0 %v1136_v48 }
 0x369   : > { %v1084_v55 = vadd.f32 %v1788_v54, %v1602_v36  ;;  %v1075_v56 = vpop.f32.mrb[39].mxu1  ;;  %1303 = vmatprep.mubr.bf16.mxu0 %v2194_v35  ;;  %v1125_v58 = vmax.f32 %v1081_v51, 0.0 }
 0x36a   : > { %v1076_v57 = vadd.f32 %v1602_v36, %v1075_v56  ;;  %v1123_v60 = vmax.f32 %v1073_v53, 0.0 }
 0x36b   : > { %v1126_v59 = vmax.f32 %v1084_v55, 0.0 }
 0x36c   : > { %v1124_v61 = vmax.f32 %v1076_v57, 0.0 }
 0x36d   : > { %v1138_v62 = vpack.c.bf16 %v1126_v59, %v1125_v58 }
 0x36e   : > { %v1137_v63 = vpack.c.bf16 %v1124_v61, %v1123_v60  ;;  %v1791_v0 = vpop.f32.mrb[40].mxu1 }
 0x36f   : > { %v1097_v1 = vadd.f32 %v1791_v0, %v1602_v36  ;;  %v1088_v2 = vpop.f32.mrb[41].mxu1 }
 0x370   : > { %v1089_v3 = vadd.f32 %v1602_v36, %v1088_v2  ;;  %v1792_v4 = vpop.f32.mrb[42].mxu1  ;;  %1304 = vmatmul.mubr.bf16.gmra.mrb[24].mxu0 %v1137_v63 }
 0x371   : > { %v1129_v5 = vmax.f32 %v1097_v1, 0.0  ;;  %v1100_v6 = vadd.f32 %v1792_v4, %v1602_v36  ;;  %v1091_v7 = vpop.f32.mrb[43].mxu1  ;;  %1313 = vmatprep.mubr.bf16.mxu0 %v2194_v35 }
 0x372   : > { %v1092_v9 = vadd.f32 %v1602_v36, %v1091_v7  ;;  %v1127_v12 = vmax.f32 %v1089_v3, 0.0 }
 0x373   : > { %v1130_v11 = vmax.f32 %v1100_v6, 0.0 }
 0x374   : > { %v1128_v13 = vmax.f32 %v1092_v9, 0.0 }
 0x375   : > { %v1140_v14 = vpack.c.bf16 %v1130_v11, %v1129_v5 }
 0x376   : > { %v1139_v15 = vpack.c.bf16 %v1128_v13, %v1127_v12  ;;  %v1795_v16 = vpop.f32.mrb[44].mxu1 }
 0x377   : > { %v1113_v17 = vadd.f32 %v1795_v16, %v1602_v36  ;;  %v1104_v18 = vpop.f32.mrb[45].mxu1 }
 0x378   : > { %1314 = vmatmul.mubr.bf16.gmra.mrb[28].mxu0 %v1138_v62  ;;  %v1105_v19 = vadd.f32 %v1602_v36, %v1104_v18  ;;  %v1796_v20 = vpop.f32.mrb[46].mxu1 }
 0x379   : > { %v1133_v8 = vmax.f32 %v1113_v17, 0.0  ;;  %v1116_v21 = vadd.f32 %v1796_v20, %v1602_v36  ;;  %v1107_v22 = vpop.f32.mrb[47].mxu1  ;;  %1323 = vmatprep.mubr.bf16.mxu0 %v2194_v35 }
 0x37a   : > { %v1131_v23 = vmax.f32 %v1105_v19, 0.0  ;;  %v1108_v24 = vadd.f32 %v1602_v36, %v1107_v22  ;;  %v2610_v36 = vrot.slane %v1159_v32, %v1167_v33 }
 0x37b   : > { %v1134_v25 = vmax.f32 %v1116_v21, 0.0 }
 0x37c   : > { %v1132_v26 = vmax.f32 %v1108_v24, 0.0 }
 0x37d   : > { %v1142_v27 = vpack.c.bf16 %v1134_v25, %v1133_v8 }
 0x37e   : > { %v1141_v28 = vpack.c.bf16 %v1132_v26, %v1131_v23 }
 0x380   : > { %1324 = vmatmul.mubr.bf16.gmra.mrb[32].mxu0 %v1139_v15 }
 0x381   : > { %1333 = vmatprep.mubr.bf16.mxu0 %v2194_v35 }
 0x388   : > { %1334 = vmatmul.mubr.bf16.gmra.mrb[36].mxu0 %v1140_v14 }
 0x389   : > { %1343 = vmatprep.mubr.bf16.mxu0 %v2194_v35 }
 0x390   : > { %1344 = vmatmul.mubr.bf16.gmra.mrb[40].mxu0 %v1141_v28 }
 0x391   : > { %1353 = vmatprep.mubr.bf16.mxu0 %v2194_v35 }
 0x398   : > { %1354 = vmatmul.mubr.bf16.gmra.mrb[44].mxu0 %v1142_v27 }
 0x433   : > { %v1285_v37 = vpop.f32.mrb[16].mxu0 }
 0x434   : > { %v1286_v38 = vadd.f32 %v1285_v37, %v2608_v34  ;;  %v1287_v39 = vpop.f32.mrb[17].mxu0 }
 0x435   : > { %v1288_v41 = vadd.f32 %v1287_v39, %v2610_v36  ;;  %v1289_v35 = vpop.f32.mrb[18].mxu0 }
 0x436   : > { %1364 = vst [vmem:[%s2616_s21] sm:$0xff] %v1286_v38  ;;  %v1290_v10 = vadd.f32 %v1289_v35, %v2608_v34  ;;  %v1291_v42 = vpop.f32.mrb[19].mxu0 }
 0x437   : > { %1365 = vst [vmem:[%s2616_s21 + $0x8] sm:$0xff] %v1288_v41  ;;  %v1292_v43 = vadd.f32 %v1291_v42, %v2610_v36 }
 0x438   : > { %1366 = vst [vmem:[%s2616_s21 + $0x10] sm:$0xff] %v1290_v10 }
 0x439   : > { %1367 = vst [vmem:[%s2616_s21 + $0x18] sm:$0xff] %v1292_v43 }
 0x43b   : > { %v1295_v44 = vpop.f32.mrb[20].mxu0 }
 0x43c   : > { %v1296_v45 = vadd.f32 %v1295_v44, %v2608_v34  ;;  %v1297_v40 = vpop.f32.mrb[21].mxu0 }
 0x43d   : > { %v1298_v46 = vadd.f32 %v1297_v40, %v2610_v36  ;;  %v1299_v47 = vpop.f32.mrb[22].mxu0 }
 0x43e   : > { %1368 = vst [vmem:[%s2616_s21 + $0x20] sm:$0xff] %v1296_v45  ;;  %v1300_v48 = vadd.f32 %v1299_v47, %v2608_v34  ;;  %v1301_v49 = vpop.f32.mrb[23].mxu0 }
 0x43f   : > { %1369 = vst [vmem:[%s2616_s21 + $0x28] sm:$0xff] %v1298_v46  ;;  %v1302_v50 = vadd.f32 %v1301_v49, %v2610_v36 }
 0x440   : > { %1370 = vst [vmem:[%s2616_s21 + $0x30] sm:$0xff] %v1300_v48 }
 0x441   : > { %1371 = vst [vmem:[%s2616_s21 + $0x38] sm:$0xff] %v1302_v50 }
 0x443   : > { %v1305_v51 = vpop.f32.mrb[24].mxu0 }
 0x444   : > { %v1306_v52 = vadd.f32 %v1305_v51, %v2608_v34  ;;  %v1307_v53 = vpop.f32.mrb[25].mxu0 }
 0x445   : > { %v1308_v54 = vadd.f32 %v1307_v53, %v2610_v36  ;;  %v1309_v55 = vpop.f32.mrb[26].mxu0 }
 0x446   : > { %1372 = vst [vmem:[%s2616_s21 + $0x40] sm:$0xff] %v1306_v52  ;;  %v1310_v56 = vadd.f32 %v1309_v55, %v2608_v34  ;;  %v1311_v57 = vpop.f32.mrb[27].mxu0 }
 0x447   : > { %1373 = vst [vmem:[%s2616_s21 + $0x48] sm:$0xff] %v1308_v54  ;;  %v1312_v58 = vadd.f32 %v1311_v57, %v2610_v36 }
 0x448   : > { %1374 = vst [vmem:[%s2616_s21 + $0x50] sm:$0xff] %v1310_v56 }
 0x449   : > { %1375 = vst [vmem:[%s2616_s21 + $0x58] sm:$0xff] %v1312_v58 }
 0x44b   : > { %v1315_v59 = vpop.f32.mrb[28].mxu0 }
 0x44c   : > { %v1316_v60 = vadd.f32 %v1315_v59, %v2608_v34  ;;  %v1317_v61 = vpop.f32.mrb[29].mxu0 }
 0x44d   : > { %v1318_v62 = vadd.f32 %v1317_v61, %v2610_v36  ;;  %v1319_v63 = vpop.f32.mrb[30].mxu0 }
 0x44e   : > { %1376 = vst [vmem:[%s2616_s21 + $0x60] sm:$0xff] %v1316_v60  ;;  %v1320_v0 = vadd.f32 %v1319_v63, %v2608_v34  ;;  %v1321_v1 = vpop.f32.mrb[31].mxu0 }
 0x44f   : > { %1377 = vst [vmem:[%s2616_s21 + $0x68] sm:$0xff] %v1318_v62  ;;  %v1322_v2 = vadd.f32 %v1321_v1, %v2610_v36 }
 0x450   : > { %1378 = vst [vmem:[%s2616_s21 + $0x70] sm:$0xff] %v1320_v0 }
 0x451   : > { %1379 = vst [vmem:[%s2616_s21 + $0x78] sm:$0xff] %v1322_v2 }
 0x453   : > { %v1325_v3 = vpop.f32.mrb[32].mxu0 }
 0x454   : > { %v1326_v4 = vadd.f32 %v1325_v3, %v2608_v34  ;;  %v1327_v5 = vpop.f32.mrb[33].mxu0 }
 0x455   : > { %v1328_v6 = vadd.f32 %v1327_v5, %v2610_v36  ;;  %v1329_v7 = vpop.f32.mrb[34].mxu0 }
 0x456   : > { %1380 = vst [vmem:[%s2616_s21 + $0x80] sm:$0xff] %v1326_v4  ;;  %v1330_v9 = vadd.f32 %v1329_v7, %v2608_v34  ;;  %v1331_v11 = vpop.f32.mrb[35].mxu0 }
 0x457   : > { %1381 = vst [vmem:[%s2616_s21 + $0x88] sm:$0xff] %v1328_v6  ;;  %v1332_v12 = vadd.f32 %v1331_v11, %v2610_v36 }
 0x458   : > { %1382 = vst [vmem:[%s2616_s21 + $0x90] sm:$0xff] %v1330_v9 }
 0x459   : > { %1383 = vst [vmem:[%s2616_s21 + $0x98] sm:$0xff] %v1332_v12 }
 0x45b   : > { %v1335_v13 = vpop.f32.mrb[36].mxu0 }
 0x45c   : > { %v1336_v14 = vadd.f32 %v1335_v13, %v2608_v34  ;;  %v1337_v15 = vpop.f32.mrb[37].mxu0 }
 0x45d   : > { %v1338_v16 = vadd.f32 %v1337_v15, %v2610_v36  ;;  %v1339_v17 = vpop.f32.mrb[38].mxu0 }
 0x45e   : > { %1384 = vst [vmem:[%s2616_s21 + $0xa0] sm:$0xff] %v1336_v14  ;;  %v1340_v18 = vadd.f32 %v1339_v17, %v2608_v34  ;;  %v1341_v19 = vpop.f32.mrb[39].mxu0 }
 0x45f   : > { %1385 = vst [vmem:[%s2616_s21 + $0xa8] sm:$0xff] %v1338_v16  ;;  %v1342_v20 = vadd.f32 %v1341_v19, %v2610_v36 }
 0x460   : > { %1386 = vst [vmem:[%s2616_s21 + $0xb0] sm:$0xff] %v1340_v18 }
 0x461   : > { %1387 = vst [vmem:[%s2616_s21 + $0xb8] sm:$0xff] %v1342_v20 }
 0x463   : > { %v1345_v8 = vpop.f32.mrb[40].mxu0 }
 0x464   : > { %v1346_v21 = vadd.f32 %v1345_v8, %v2608_v34  ;;  %v1347_v22 = vpop.f32.mrb[41].mxu0 }
 0x465   : > { %v1348_v23 = vadd.f32 %v1347_v22, %v2610_v36  ;;  %v1349_v24 = vpop.f32.mrb[42].mxu0 }
 0x466   : > { %1388 = vst [vmem:[%s2616_s21 + $0xc0] sm:$0xff] %v1346_v21  ;;  %v1350_v25 = vadd.f32 %v1349_v24, %v2608_v34  ;;  %v1351_v26 = vpop.f32.mrb[43].mxu0 }
 0x467   : > { %1389 = vst [vmem:[%s2616_s21 + $0xc8] sm:$0xff] %v1348_v23  ;;  %v1352_v27 = vadd.f32 %v1351_v26, %v2610_v36 }
 0x468   : > { %1390 = vst [vmem:[%s2616_s21 + $0xd0] sm:$0xff] %v1350_v25 }
 0x469   : > { %1391 = vst [vmem:[%s2616_s21 + $0xd8] sm:$0xff] %v1352_v27 }
 0x46b   : > { %v1355_v28 = vpop.f32.mrb[44].mxu0 }
 0x46c   : > { %v1356_v29 = vadd.f32 %v1355_v28, %v2608_v34  ;;  %v1357_v30 = vpop.f32.mrb[45].mxu0 }
 0x46d   : > { %v1358_v31 = vadd.f32 %v1357_v30, %v2610_v36  ;;  %v1359_v32 = vpop.f32.mrb[46].mxu0 }
 0x46e   : > { %1392 = vst [vmem:[%s2616_s21 + $0xe0] sm:$0xff] %v1356_v29  ;;  %v1360_v33 = vadd.f32 %v1359_v32, %v2608_v34  ;;  %v1361_v37 = vpop.f32.mrb[47].mxu0 }
 0x46f   : > { %1393 = vst [vmem:[%s2616_s21 + $0xe8] sm:$0xff] %v1358_v31  ;;  %v1362_v38 = vadd.f32 %v1361_v37, %v2610_v36 }
 0x470   : > { %1394 = vst [vmem:[%s2616_s21 + $0xf0] sm:$0xff] %v1360_v33 }
 0x471   : > { %1395 = vst [vmem:[%s2616_s21 + $0xf8] sm:$0xff] %v1362_v38 }
 0x472   : > { %2120 = shalt.err (!%p2117_p9)
}
 0x473   : > { %s2121_s27 = scalar_lea.hbm %s2681_s29, 4096  ;;  %s2125_s21 = scalar_lea.hbm %s2767_s11, 8192 }
 0x474   : > { %p2122_p0 = scmp.ne.s32.totalorder %s2681_s29, %s2121_s27  ;;  %p2126_p8 = scmp.lt.u32.totalorder %s2681_s29, %s2767_s11 }
 0x475   : > { %p2127_p6 = scmp.lt.u32.totalorder %s2125_s21, %s2121_s27  ;;  %p2129_p5 = scmp.lt.u32.totalorder %s2121_s27, %s2681_s29 }
 0x476   : > { %p2123_p11 = pnand %p2122_p0, %p2424_p3 }
 0x477   : > { %p2128_p10 = por %p2127_p6, %p2126_p8 }
 0x478   : > { %p2124_p4 = pneg %p2123_p11 }
 0x479   : > { %p2130_p7 = por %p2129_p5, %p2128_p10 }
 0x47b   : > { %p2131_p12 = pnand %p2130_p7, %p2124_p4 }
 0x47d   : > { %2134 = shalt.err (!%p2131_p12)
}
 0x47e   : > { %s2196_s22 = smov 256   ;;  %s2197_s28 = smov 16  }
 0x47f   : > { %1831 = dma.vmem_to_hbm [thread:$0]  (%p2424_p3), %s2683_s23, 4096, %s2681_s29, %s1397_s17, %s2196_s22, %s2196_s22, %s2197_s28  }
 0x480 PF: > { %s2768_s9 = sld [smem:[#allocation16_spill]]  ;;  %s2769_s26 = sld [smem:[#allocation17_spill]] }
 0x481   : > { %p2771_p2 = scmp.ge.s32.totalorder %s2181_s16, 2 }
 0x486   : > { %s1435_s20 = sand.u32 1, %s2768_s9   ;;  %p2770_p1 = scmp.ne.s32.totalorder %s2769_s26, 0 }
 0x487   : > { %s1436_s27 = scalar_lea.sflag [#allocation4], %s1435_s20 }
 0x488   : > { %p1851_p13 = pnand %p2771_p2, %p2770_p1 }
 0x48a   : > { %2164 = dma.done.wait (!%p1851_p13), %s1436_s27, 4096  }
 0x48b   : > { %2166 = vsyncadd (!%p1851_p13), %s1436_s27, 4294963200  ;;  %p26_p9 = scmp.ge.s32.totalorder %s2411_s8, 4   ;;  %s2772_s13 = smov %s2173_s14 }
 0x48c   : > { %s2773_s14 = smov %s2177_s15  ;;  %s2774_s15 = smov %s2420_s12 }
 0x48d   : > { %s2775_s16 = smov %s2411_s8  ;;  %28 = sbr.rel (!%p26_p9) target bundleno = 10 (0xa), region = 129 }
 0x494   :  { %1449 = vsyncpa [#allocation3], 1 }
 0x495   :  { %1451 = vsyncpa [#allocation3 + $0x1], 1 }
 0x496   :  { %1452 = vsyncpa [#allocation6], 1 }
 0x497   :  { %1453 = vsyncpa [#allocation9], 1 }
 0x498   :  { %1454 = vsyncpa [#allocation4], 1 }
 0x499   :  { %1456 = vsyncpa [#allocation4 + $0x1], 1 }

</bundles_post_ra>
